<compile_context>
chip_gen: v6e
topology: v6e:2x2x1
jax: 0.10.0
libtpu: 0.0.40
codegen_flags: <defaults>
</compile_context>

<pallas_src>
import functools

import jax
import jax.numpy as jnp
from jax.experimental import pallas as pl
from jax.experimental.pallas import tpu as pltpu


def _blur_matrix(size: int, out_size: int, stride: int) -> jnp.ndarray:
    """(out_size, size) matrix B with B[i, p] = ([1,2,1]/4)[p - (stride*i - 1)].

    Applying B along an axis performs the zero-padded 1-D [1,2,1]/4 blur *and* the stride
    decimation in one matmul; outer(row_h, row_w) == [1,2,1]^2/16, i.e. the PyTorch buffer.
    """
    taps = jnp.array([0.25, 0.5, 0.25], dtype=jnp.float32)
    i = jnp.arange(out_size, dtype=jnp.int32)[:, None]   # output index
    p = jnp.arange(size, dtype=jnp.int32)[None, :]       # input index
    d = p - (stride * i - 1)                              # offset into the 3-tap window
    valid = (d >= 0) & (d <= 2)
    return jnp.where(valid, taps[jnp.clip(d, 0, 2)], 0.0).astype(jnp.float32)


def _aa_kernel(bh_ref, bw_ref, x_ref, o_ref, t_ref, *, tc: int, compute_dtype, batched_h: bool):
    # bh_ref: (Hout, H); bw_ref: (W, Wout)   -- constant, resident in VMEM
    # x_ref:  (TC, H, W)        one batch element, TC channel planes (batch dim squeezed)
    # o_ref:  (TC, Hout, Wout)
    # t_ref:  (TC*Hout, W)      scratch for the vertical-pass intermediate
    hout, h = bh_ref.shape
    w, wout = bw_ref.shape

    if batched_h:
        # Vertical pass: per-plane (Hout,H)@(H,W) matmuls into the tall scratch (no static unroll).
        @pl.loop(0, tc)
        def _(ci):
            x = x_ref[ci].astype(compute_dtype)
            t = jnp.dot(bh_ref[...], x, preferred_element_type=jnp.float32)
            row = pl.multiple_of(ci * hout, 8)        # Hout % 8 == 0 on this path
            t_ref[pl.ds(row, hout), :] = t.astype(t_ref.dtype)

        # Horizontal pass: ONE tall lane-dense MXU matmul + ONE whole-block output store.
        y = jnp.dot(t_ref[...], bw_ref[...], preferred_element_type=jnp.float32)
        o_ref[...] = y.reshape(tc, hout, wout).astype(o_ref.dtype)
    else:
        # Fallback when Hout % 8 != 0: the (TC,Hout,W)->(TC*Hout,W) flatten would force a relayout.
        @pl.loop(0, tc)
        def _(ci):
            x = x_ref[ci].astype(compute_dtype)
            t = jnp.dot(bh_ref[...], x, preferred_element_type=jnp.float32).astype(compute_dtype)
            y = jnp.dot(t, bw_ref[...], preferred_element_type=jnp.float32)
            o_ref[ci] = y.astype(o_ref.dtype)


def _choose_channel_tile(c, h, w, hout, wout, io_itemsize, comp_itemsize, budget_bytes):
    """Pick TC (channels per grid step) from a per-step VMEM budget.

    Accounts for double-buffered input/output blocks, the vertical-pass scratch, and the f32
    batched-matmul result. Prefers an exact divisor of C; pads C when its divisors are all tiny
    (e.g. prime C) rather than collapsing to TC=1.
    """
    per_ch = (2 * h * w * io_itemsize            # input block, double-buffered
              + 2 * hout * wout * io_itemsize    # output block, double-buffered
              + hout * w * comp_itemsize         # vertical-pass scratch
              + hout * wout * 4)                 # f32 result of the batched horizontal matmul
    tc_cap = int(max(1, min(c, budget_bytes // max(per_ch, 1))))
    tc_div = max(d for d in range(1, tc_cap + 1) if c % d == 0)
    if 2 * tc_div > tc_cap:                      # divisor is big enough -> no padding needed
        return tc_div, c
    tc = tc_cap
    c_pad = -(-c // tc) * tc
    return tc, c_pad


def anti_alias_downsample(x_nchw: jnp.ndarray, stride: int) -> jnp.ndarray:
    """Equivalent of F.conv2d(x, filt, stride=stride, padding=1, groups=C), filt = [1,2,1]^2/16."""
    n, c, h, w = x_nchw.shape
    hout = (h - 1) // stride + 1      # == (h + 2*1 - 3)//stride + 1
    wout = (w - 1) // stride + 1

    # bf16 inputs get native bf16 MXU operands; everything else computes in f32.
    compute_dtype = jnp.bfloat16 if x_nchw.dtype == jnp.bfloat16 else jnp.float32
    bh = _blur_matrix(h, hout, stride).astype(compute_dtype)      # (Hout, H)
    bw = _blur_matrix(w, wout, stride).T.astype(compute_dtype)    # (W, Wout)

    io_item = jnp.dtype(x_nchw.dtype).itemsize
    comp_item = jnp.dtype(compute_dtype).itemsize
    # ~12 MiB working set: amortizes per-step overhead while staying well under the scoped VMEM
    # limit we request below on every generation (v5e/v6e 128 MiB phys, v7x 64 MiB per TC).
    tc, c_pad = _choose_channel_tile(c, h, w, hout, wout, io_item, comp_item,
                                     budget_bytes=12 * 1024 * 1024)
    if c_pad != c:
        x_nchw = jnp.pad(x_nchw, ((0, 0), (0, c_pad - c), (0, 0), (0, 0)))

    batched_h = (hout % 8) == 0       # free (TC,Hout,W)->(TC*Hout,W) flatten only then

    kernel = functools.partial(_aa_kernel, tc=tc, compute_dtype=compute_dtype,
                               batched_h=batched_h)

    flops = 2 * n * c_pad * hout * w * (h + wout)
    bytes_accessed = n * c_pad * (h * w + hout * wout) * io_item

    out = pl.pallas_call(
        kernel,
        out_shape=jax.ShapeDtypeStruct((n, c_pad, hout, wout), x_nchw.dtype),
        grid=(n, c_pad // tc),
        in_specs=[
            pl.BlockSpec((hout, h), lambda b, cb: (0, 0)),     # Bh: fetched once, stays resident
            pl.BlockSpec((w, wout), lambda b, cb: (0, 0)),     # Bw: fetched once, stays resident
            pl.BlockSpec((pl.Squeezed(), tc, h, w), lambda b, cb: (b, cb, 0, 0)),
        ],
        out_specs=pl.BlockSpec((pl.Squeezed(), tc, hout, wout), lambda b, cb: (b, cb, 0, 0)),
        scratch_shapes=[pltpu.VMEM((tc * hout, w), compute_dtype)],
        compiler_params=pltpu.CompilerParams(
            dimension_semantics=("parallel", "parallel"),      # shardable across v7x's 2 TCs
            vmem_limit_bytes=32 * 1024 * 1024,                 # v5e default scoped limit is 16 MiB
        ),
        cost_estimate=pl.CostEstimate(flops=int(flops), transcendentals=0,
                                      bytes_accessed=int(bytes_accessed)),
    )(bh, bw, x_nchw)
    if c_pad != c:
        out = out[:, :c]
    return out


def _reference(x_nchw, stride: int):
    """Pure-JAX reference (XLA depthwise conv), used only for verification."""
    c = x_nchw.shape[1]
    a = jnp.array([1.0, 2.0, 1.0], dtype=jnp.float32)
    filt = a[:, None] * a[None, :]
    filt = filt / jnp.sum(filt)
    filt_oihw = jnp.broadcast_to(filt[None, None, :, :], (c, 1, 3, 3)).astype(x_nchw.dtype)
    return jax.lax.conv_general_dilated(
        x_nchw,
        filt_oihw,
        window_strides=(stride, stride),
        padding=((1, 1), (1, 1)),
        feature_group_count=c,
        dimension_numbers=("NCHW", "OIHW", "NCHW"),
    )


if __name__ == "__main__":
    key = jax.random.PRNGKey(0)
    N, C, H, W = 2, 4, 16, 16
    x = jax.random.normal(key, (N, C, H, W), dtype=jnp.float32)

    for stride in (2, 1):
        out = jax.block_until_ready(anti_alias_downsample(x, stride))
        ref = jax.block_until_ready(_reference(x, stride))
        assert out.shape == ref.shape, (stride, out.shape, ref.shape)
        err = float(jnp.max(jnp.abs(out - ref)))
        assert jnp.allclose(out, ref, atol=1e-5, rtol=1e-5), (stride, err)

    # Also exercise the non-batched fallback path (Hout not a multiple of 8, odd C).
    x2 = jax.random.normal(jax.random.PRNGKey(1), (1, 3, 12, 12), dtype=jnp.float32)
    out2 = jax.block_until_ready(anti_alias_downsample(x2, 2))
    ref2 = jax.block_until_ready(_reference(x2, 2))
    assert out2.shape == ref2.shape, (out2.shape, ref2.shape)
    assert jnp.allclose(out2, ref2, atol=1e-5, rtol=1e-5)

    print("KERNEL_OK")
</pallas_src>

<mosaic_0001>
module attributes {stable_mosaic.version = 11 : i64} {
  func.func @_aa_kernel(%arg0: i32, %arg1: i32, %arg2: memref<8x16xf32, #tpu.memory_space<vmem>>, %arg3: memref<16x8xf32, #tpu.memory_space<vmem>>, %arg4: memref<1x4x16x16xf32, #tpu.memory_space<vmem>>, %arg5: memref<1x4x8x8xf32, #tpu.memory_space<vmem>>, %arg6: memref<32x16xf32, #tpu.memory_space<vmem>>) attributes {dimension_semantics = [#tpu.dimension_semantics<parallel>, #tpu.dimension_semantics<parallel>], iteration_bounds = array<i64: 2, 1>, scalar_prefetch = 0 : i64, scratch_operands = 1 : i64, tpu.core_type = #tpu.core_type<tc>, window_params = [{pipeline_mode = #tpu.pipeline_mode<synchronous>, transform_indices = @transform_0, window_bounds = array<i64: 8, 16>}, {pipeline_mode = #tpu.pipeline_mode<synchronous>, transform_indices = @transform_1, window_bounds = array<i64: 16, 8>}, {transform_indices = @transform_2, window_bounds = array<i64: 1, 4, 16, 16>}, {transform_indices = @transform_3, window_bounds = array<i64: 1, 4, 8, 8>}]} {
    %c0_i32 = arith.constant 0 : i32
    %c4_i32 = arith.constant 4 : i32
    %0 = arith.addi %c0_i32, %c4_i32 : i32
    %c1_i32 = arith.constant 1 : i32
    scf.for %arg7 = %c0_i32 to %0 step %c1_i32  : i32 {
      %c1_i32_8 = arith.constant 1 : i32
      %8 = arith.muli %arg7, %c1_i32_8 : i32
      %c0_i32_9 = arith.constant 0 : i32
      %9 = arith.addi %c0_i32_9, %8 : i32
      %c0_10 = arith.constant 0 : index
      %10 = arith.index_cast %9 : i32 to index
      %c0_11 = arith.constant 0 : index
      %c0_12 = arith.constant 0 : index
      %11 = vector.load %arg4[%c0_10, %10, %c0_11, %c0_12] : memref<1x4x16x16xf32, #tpu.memory_space<vmem>>, vector<1x1x16x16xf32>
      %12 = vector.shape_cast %11 : vector<1x1x16x16xf32> to vector<16x16xf32>
      %c0_13 = arith.constant 0 : index
      %c0_14 = arith.constant 0 : index
      %13 = vector.load %arg2[%c0_13, %c0_14] : memref<8x16xf32, #tpu.memory_space<vmem>>, vector<8x16xf32>
      %cst_15 = arith.constant dense<0.000000e+00> : vector<8x16xf32>
      %14 = tpu.matmul %13, %12, %cst_15 {dimension_numbers = #tpu.dot_dimension_numbers<[1], [0], [0], [1], [0, 0, 1, 1], [], []>} : vector<8x16xf32>, vector<16x16xf32>, vector<8x16xf32> -> vector<8x16xf32>
      %c8_i32 = arith.constant 8 : i32
      %15 = arith.muli %9, %c8_i32 : i32
      %16 = tpu.assume_multiple %15, 8 : i32
      %17 = arith.index_cast %16 : i32 to index
      %c0_16 = arith.constant 0 : index
      %18 = vector.load %arg6[%17, %c0_16] : memref<32x16xf32, #tpu.memory_space<vmem>>, vector<8x16xf32>
      tpu.vector_store %arg6[%17, %c0_16], %14 {strides = array<i32>} : memref<32x16xf32, #tpu.memory_space<vmem>>, vector<8x16xf32>,
    }
    %c4_i32_0 = arith.constant 4 : i32
    %c0 = arith.constant 0 : index
    %c0_1 = arith.constant 0 : index
    %1 = vector.load %arg6[%c0, %c0_1] : memref<32x16xf32, #tpu.memory_space<vmem>>, vector<32x16xf32>
    %c0_2 = arith.constant 0 : index
    %c0_3 = arith.constant 0 : index
    %2 = vector.load %arg3[%c0_2, %c0_3] : memref<16x8xf32, #tpu.memory_space<vmem>>, vector<16x8xf32>
    %cst = arith.constant dense<0.000000e+00> : vector<32x8xf32>
    %3 = tpu.matmul %1, %2, %cst {dimension_numbers = #tpu.dot_dimension_numbers<[1], [0], [0], [1], [0, 0, 1, 1], [], []>} : vector<32x16xf32>, vector<16x8xf32>, vector<32x8xf32> -> vector<32x8xf32>
    %4 = vector.shape_cast %3 : vector<32x8xf32> to vector<4x8x8xf32>
    %c0_4 = arith.constant 0 : index
    %c0_5 = arith.constant 0 : index
    %c0_6 = arith.constant 0 : index
    %c0_7 = arith.constant 0 : index
    %5 = vector.load %arg5[%c0_4, %c0_5, %c0_6, %c0_7] : memref<1x4x8x8xf32, #tpu.memory_space<vmem>>, vector<1x4x8x8xf32>
    %6 = vector.shape_cast %5 : vector<1x4x8x8xf32> to vector<4x8x8xf32>
    %7 = vector.shape_cast %4 : vector<4x8x8xf32> to vector<1x4x8x8xf32>
    tpu.vector_store %arg5[%c0_4, %c0_5, %c0_6, %c0_7], %7 {strides = array<i32>} : memref<1x4x8x8xf32, #tpu.memory_space<vmem>>, vector<1x4x8x8xf32>,
    return
  }
  func.func @transform_0(%arg0: i32, %arg1: i32) -> (i32, i32) {
    %c0_i32 = arith.constant 0 : i32
    %c0_i32_0 = arith.constant 0 : i32
    %c0_i32_1 = arith.constant 0 : i32
    return %c0_i32, %c0_i32_0 : i32, i32
  }
  func.func @transform_1(%arg0: i32, %arg1: i32) -> (i32, i32) {
    %c0_i32 = arith.constant 0 : i32
    %c0_i32_0 = arith.constant 0 : i32
    %c0_i32_1 = arith.constant 0 : i32
    return %c0_i32, %c0_i32_0 : i32, i32
  }
  func.func @transform_2(%arg0: i32, %arg1: i32) -> (i32, i32, i32, i32) {
    %c0_i32 = arith.constant 0 : i32
    %c0_i32_0 = arith.constant 0 : i32
    %c0_i32_1 = arith.constant 0 : i32
    return %arg0, %arg1, %c0_i32, %c0_i32_0 : i32, i32, i32, i32
  }
  func.func @transform_3(%arg0: i32, %arg1: i32) -> (i32, i32, i32, i32) {
    %c0_i32 = arith.constant 0 : i32
    %c0_i32_0 = arith.constant 0 : i32
    %c0_i32_1 = arith.constant 0 : i32
    return %arg0, %arg1, %c0_i32, %c0_i32_0 : i32, i32, i32, i32
  }
}

</mosaic_0001>

<bundles_post_ra>
// kernel: tpu_custom_call.1
= control target key start
LH: loop header
LB: loop body
LE: loop exit
PB: predicated region body
PF: predicated region fallthrough
CT: control target
= control target key end

     0   :  { %8 = vsyncpa [#allocation4], 0  ;;  %s967_s0 = inlined_call_operand.vmem [shape: f32[8,16], index: 0, kind: input, shape index: {}]   ;;  %s968_s1 = inlined_call_operand.vmem [shape: f32[16,8], index: 1, kind: input, shape index: {}]   ;;  %s969_s2 = inlined_call_operand.hbm [shape: f32[2,4,16,16], index: 2, kind: input, shape index: {}]   ;;  %s970_s3 = inlined_call_operand.hbm [shape: f32[2,4,8,8], index: 3, kind: output, shape index: {}]  }
   0x1   :  { %10 = vsyncpa [#allocation4 + $0x1], 0 }
   0x2   :  { %11 = vsyncpa [#allocation5], 0 }
   0x3   :  { %13 = vsyncpa [#allocation5 + $0x1], 0  ;;  %s795_s12 = smov 0   ;;  %s797_s13 = smov 0  }
   0x4   :  { %s799_s14 = smov 0   ;;  %s801_s15 = smov 0  }
   0x5   :  { %s803_s16 = smov 0   ;;  %s805_s17 = smov 0  }
   0x6 LB: > { %s519_s18 = sadd.s32 4294967295, %s761_s17   ;;  %s520_s19 = sadd.s32 4294967294, %s761_s17   ;;  %s761_s17 = sphi %s805_s17, %s19_s17   ;;  %s757_s16 = sphi %s803_s16, %s981_s16   ;;  %s753_s15 = sphi %s801_s15, %s980_s15   ;;  %s749_s14 = sphi %s799_s14, %s979_s14   ;;  %s745_s13 = sphi %s797_s13, %s978_s13   ;;  %s741_s12 = sphi %s795_s12, %s977_s12  }
   0x7   : > { %s31_s20 = sadd.s32 1, %s757_s16  ;;  %s82_s21 = sadd.s32 1, %s749_s14 }
   0x8   : > { %p33_p0 = scmp.ge.s32.totalorder %s31_s20, 2  ;;  %p89_p1 = scmp.ne.s32.totalorder %s749_s14, %s745_s13 }
   0x9   : > { %p90_p2 = scmp.eq.s32.totalorder %s761_s17, 0  ;;  %p95_p3 = scmp.ne.s32.totalorder %s745_s13, %s741_s12 }
   0xa   : > { %s983_s20 = smov (%p33_p0, %s31_s20), 0  ;;  %p96_p5 = scmp.eq.s32.totalorder %s519_s18, 0 }
   0xb   : > { %p836_p4 = por %p90_p2, %p89_p1  ;;  %s77_s23 = ssub.s32 %s757_s16, %s983_s20 }
   0xc   : > { %p121_p6 = scmp.eq.s32.totalorder %s519_s18, 1  ;;  %p80_p7 = scmp.eq.s32.totalorder %s77_s23, 0 }
   0xd   : > { %p842_p8 = por %p96_p5, %p95_p3  ;;  %p127_p10 = scmp.eq.s32.totalorder %s520_s19, 1 }
   0xe   : > { %p846_p9 = por %p121_p6, %p89_p1  ;;  %p585_p13 = scmp.lt.s32.totalorder %s761_s17, 2 }
   0xf   : > { %s851_s26 = scalar_select %p80_p7, %s749_s14, %s82_s21  }
  0x10   : > { %p853_p11 = por %p127_p10, %p95_p3  ;;  %s153_s28 = sand.u32 1, %s749_s14  }
  0x11   : > { %s523_s29 = sshll.u32 %s153_s28, 6  ;;  %s541_s30 = sshll.u32 %s757_s16, 10 }
  0x12   : > { %s166_s6 = scalar_lea.hbm %s969_s2, %s541_s30  ;;  %s157_s7 = scalar_lea.vmem [#allocation3], %s523_s29 }
  0x13   : > { %s167_s8 = sshll.u32 %s157_s7, 4  ;;  %p866_p0 = pnand %p585_p13, %p836_p4  ;;  %s168_s8 = int_to_ptr.vmem [resolvable:$true] %s167_s8 }
  0x14   : > { %p526_p1 = scmp.ge.s32.totalorder %s761_s17, 1  ;;  %s154_s10 = scalar_lea.sflag [#allocation4], %s153_s28 }
  0x15   : > { %p651_p2 = pneg %p866_p0  ;;  %s662_s11 = scalar_lea.vmem %s168_s8, 1024 }
  0x16   : > { %p663_p3 = scmp.ne.s32.totalorder %s168_s8, %s662_s11  ;;  %s767_s18 = smov [#allocation3]  }
  0x17   : > { %s667_s19 = sshll.u32 %s767_s18, 4  ;;  %s668_s19 = int_to_ptr.vmem [resolvable:$false] %s667_s19 }
  0x18   : > { %p665_p5 = pnand %p663_p3, %p651_p2  ;;  %s669_s21 = scalar_lea.vmem %s668_s19, 2048 }
  0x19   : > { %p670_p7 = scmp.lt.s32.totalorder %s168_s8, %s668_s19  ;;  %p671_p10 = scmp.lt.s32.totalorder %s669_s21, %s662_s11 }
  0x1a   : > { %p666_p6 = pneg %p665_p5 }
  0x1b   : > { %p672_p12 = por %p671_p10, %p670_p7 }
  0x1d   : > { %p673_p4 = pnand %p672_p12, %p666_p6 }
  0x1f   : > { %676 = shalt.err (!%p673_p4)
}
  0x20   : > { %s768_s22 = smov 128   ;;  %s769_s23 = smov 8  }
  0x21   : > { %580 = dma.hbm_to_vmem [thread:$0]  (!%p866_p0), %s166_s6, 1024, %s168_s8, %s154_s10, %s768_s22, %s768_s22, %s769_s23  }
  0x22   : > { %p175_p13 = scmp.lt.s32.totalorder %s761_s17, 3 }
  0x24   : > { %p176_p2 = pnand %p526_p1, %p175_p13 }
  0x25   : > { %s879_s28 = sand.u32 (!%p176_p2), 1, %s745_s13  }
  0x26   : > { %179 = sbr.rel (%p176_p2) target bundleno = 463 (0x1cf), region = 32  ;;  %s527_s29 = sshll.u32 (!%p176_p2), %s879_s28, 6 }
  0x27   : > { %s182_s30 = scalar_lea.sflag (!%p176_p2), [#allocation4], %s879_s28  ;;  %s883_s4 = scalar_lea.vmem (!%p176_p2), [#allocation3], %s527_s29 }
  0x2b   : > { %732 = dma.done.wait (%p842_p8), %s182_s30, 1024  }
  0x2c   : > { %734 = vsyncadd (%p842_p8), %s182_s30, 4294966272  ;;  %s528_s5 = sshll.u32 %s879_s28, 5  ;;  %s763_s7 = smov 0  }
  0x2d   : > { %s890_s6 = scalar_lea.vmem [#allocation6], %s528_s5 }
  0x2e LB: >> { %v770_v0 = vmov 0.0   ;;  %vm771_vm0 = vmmov 0   ;;  %s529_s8 = sshll.u32 %s765_s7, 4  ;;  %v220_v3 = vld [vmem:[%s967_s0] sm:$0xff]  ;;  %vm221_vm1 = vcmask 130048   ;;  %s531_s11 = sshll.u32 %s765_s7, 3  ;;  %s765_s7 = sphi %s763_s7, %s215_s7  }
  0x2f   : >> { %552 = vmatprep.subr.mxu0 %v770_v0  ;;  %556 = vmatprep.mubr.msk.f32.mxu0 %vm771_vm0, %v770_v0  ;;  %s217_s9 = scalar_lea.vmem %s883_s4, %s529_s8 [#allocation3]  ;;  %s296_s18 = scalar_lea.vmem [#allocation2], %s531_s11 }
  0x30   : >> { %v219_v1 = vld [vmem:[%s217_s9 + $0x8] sm:$0xff]  ;;  %v218_v2 = vld [vmem:[%s217_s9] sm:$0xff]  ;;  %s215_s7 = sadd.s32 1, %s765_s7  }
  0x31   : >> { %553 = vmatpush3.msra.mxu0 %v219_v1  ;;  %p212_p8 = scmp.ge.s32.totalorder %s215_s7, 4  }
  0x32   : >> { %554 = vmatprep.subr.mxu0 %v770_v0  ;;  %v303_v6 = vld [vmem:[%s968_s1 + $0x8] sm:$0xff] (%p212_p8)  ;;  %v302_v7 = vld [vmem:[%s968_s1] sm:$0xff] (%p212_p8)  ;;  %s542_s29 = sshll.u32 (%p212_p8), %s753_s15, 9  ;;  %s423_s30 = sshll.u32 (%p212_p8), %s890_s6, 4  ;;  %vm402_vm2 = vcmask (%p212_p8), 64512   ;;  %s915_s30 = int_to_ptr.vmem [resolvable:$true] %s423_s30 }
  0x33   : >> { %555 = vmatpush3.msra.mxu0 %v218_v2  ;;  %569 = vmatprep.subr.mxu1 (%p212_p8), %v303_v6  ;;  %s913_s7 = scalar_lea.hbm (%p212_p8), %s970_s3, %s542_s29  ;;  %s408_s15 = scalar_lea.sflag (%p212_p8), [#allocation5], %s879_s28 }
  0x34   : >> { %557 = vmatmul.mubr.msk.f32.vlgmr.msra.gmra.mxu0 %vm221_vm1, %v220_v3  ;;  %559 = vmatprep.subr.mxu0 (%p212_p8), %v303_v6  ;;  %s677_s8 = scalar_lea.vmem (%p212_p8), %s915_s30, 512  ;;  %s772_s9 = smov (%p212_p8), [#allocation6]  }
  0x35   : > { %560 = vmatpush3.msra.mxu0 (%p212_p8), %v303_v6  ;;  %571 = vmatpush3.msra.mxu1 (%p212_p8), %v303_v6  ;;  %p678_p12 = scmp.ne.s32.totalorder (%p212_p8), %s915_s30, %s677_s8  ;;  %s681_s24 = sshll.u32 (%p212_p8), %s772_s9, 4  ;;  %s682_s24 = int_to_ptr.vmem [resolvable:$false] %s681_s24 }
  0x36   : > { %561 = vmatprep.subr.mxu0 (%p212_p8), %v302_v7  ;;  %570 = vmatprep.subr.mxu1 (%p212_p8), %v302_v7  ;;  %s683_s10 = scalar_lea.vmem (%p212_p8), %s682_s24, 1024  ;;  %p684_p3 = scmp.lt.s32.totalorder (%p212_p8), %s915_s30, %s682_s24 }
  0x37   : > { %562 = vmatpush3.msra.mxu0 (%p212_p8), %v302_v7  ;;  %572 = vmatpush3.msra.mxu1 (%p212_p8), %v302_v7  ;;  %p679_p0 = pnand (%p212_p8), %p678_p12, %p846_p9  ;;  %p685_p5 = scmp.lt.s32.totalorder (%p212_p8), %s683_s10, %s677_s8 }
  0x39   : > { %p680_p1 = pneg (%p212_p8), %p679_p0  ;;  %p686_p6 = por (%p212_p8), %p685_p5, %p684_p3 }
  0x3b   : > { %p687_p7 = pnand (%p212_p8), %p686_p6, %p680_p1 }
  0xf2   : > { %214 = sbr.rel (!%p212_p8) target bundleno = 46 (0x2e), region = 86 }
  0xf4   : >> { %v291_v4 = vpop.f32.mrf.mxu0 }
  0xf5   : >> { %297 = vst.msk [vmem:[%s296_s18] sm:$0xff] %vm221_vm1, %v291_v4 }
  0xf6   : >> { %v558_v5 = vpop.f32.mrf.mxu0 }
  0xfc   : > { %v298_v8 = vld [vmem:[#allocation2] sm:$0xff]  ;;  %v300_v9 = vld [vmem:[#allocation2 + $0x10] sm:$0xff]  ;;  %v299_v10 = vld [vmem:[#allocation2 + $0x8] sm:$0xff] }
  0xfd   : > { %v301_v11 = vld [vmem:[#allocation2 + $0x18] sm:$0xff]  ;;  %563 = vmatprep.mubr.msk.f32.mxu0 %vm221_vm1, %v298_v8  ;;  %566 = vmatprep.mubr.msk.f32.mxu1 %vm221_vm1, %v300_v9 }
  0xfe   : > { %564 = vmatmul.mubr.msk.f32.vlgmr.msra.gmra.mxu0 %vm221_vm1, %v299_v10  ;;  %567 = vmatmul.mubr.msk.f32.vlgmr.msra.gmra.mxu1 %vm221_vm1, %v301_v11 }
 0x1be   : > { %v565_v12 = vpop.f32.mrf.mxu0  ;;  %v568_v13 = vpop.f32.mrf.mxu1 }
 0x1bf   : > { %404 = vst.msk [vmem:[%s890_s6 + $0x8] sm:$0xff] %vm402_vm2, %v565_v12  ;;  %406 = vst.msk [vmem:[%s890_s6 + $0x18] sm:$0xff] %vm402_vm2, %v568_v13 }
 0x1c0   : > { %v383_v14 = vpop.f32.mrf.mxu0  ;;  %v393_v15 = vpop.f32.mrf.mxu1 }
 0x1c1   : > { %403 = vst.msk [vmem:[%s890_s6] sm:$0xff] %vm402_vm2, %v383_v14  ;;  %405 = vst.msk [vmem:[%s890_s6 + $0x10] sm:$0xff] %vm402_vm2, %v393_v15 }
 0x1c2   : > { %690 = shalt.err (!%p687_p7)
}
 0x1c3   : > { %s691_s6 = scalar_lea.hbm %s913_s7, 512  ;;  %s695_s19 = scalar_lea.hbm %s970_s3, 1024 }
 0x1c4   : > { %p692_p10 = scmp.ne.s32.totalorder %s913_s7, %s691_s6  ;;  %p696_p2 = scmp.lt.s32.totalorder %s913_s7, %s970_s3 }
 0x1c5   : > { %p697_p8 = scmp.lt.s32.totalorder %s695_s19, %s691_s6 }
 0x1c6   : > { %p693_p4 = pnand %p692_p10, %p846_p9 }
 0x1c7   : > { %p698_p12 = por %p697_p8, %p696_p2 }
 0x1c8   : > { %p694_p13 = pneg %p693_p4 }
 0x1ca   : > { %p699_p0 = pnand %p698_p12, %p694_p13 }
 0x1cc   : > { %702 = shalt.err (!%p699_p0)
}
 0x1cd   : > { %s773_s23 = smov 128   ;;  %s774_s29 = smov 8  }
 0x1ce   : > { %575 = dma.vmem_to_hbm [thread:$0]  (%p846_p9), %s915_s30, 512, %s913_s7, %s408_s15, %s773_s23, %s773_s23, %s774_s29  }
 0x1cf PF: > { %s438_s4 = sand.u32 1, %s741_s12   ;;  %p976_p1 = scmp.ge.s32.totalorder %s761_s17, 2 }
 0x1d0   : > { %s439_s5 = scalar_lea.sflag [#allocation5], %s438_s4 }
 0x1d1   : > { %p582_p3 = pnand %p976_p1, %p853_p11 }
 0x1d3   : > { %p583_p5 = pneg %p582_p3 }
 0x1d5   : > { %736 = dma.done.wait (%p583_p5), %s439_s5, 512  }
 0x1d6   : > { %738 = vsyncadd (%p583_p5), %s439_s5, 4294966784  ;;  %s19_s17 = sadd.s32 1, %s761_s17   ;;  %s977_s12 = smov %s745_s13 }
 0x1d7   : > { %p16_p6 = scmp.ge.s32.totalorder %s19_s17, 4   ;;  %s978_s13 = smov %s749_s14 }
 0x1d8   : > { %s979_s14 = smov %s851_s26  ;;  %s980_s15 = smov %s757_s16 }
 0x1d9   : > { %s981_s16 = smov %s983_s20  ;;  %18 = sbr.rel (!%p16_p6) target bundleno = 6 (0x6), region = 97 }
 0x1de   :  { %444 = vsyncpa [#allocation4], 1 }
 0x1df   :  { %446 = vsyncpa [#allocation4 + $0x1], 1 }
 0x1e0   :  { %447 = vsyncpa [#allocation5], 1 }
 0x1e1   :  { %449 = vsyncpa [#allocation5 + $0x1], 1 }

</bundles_post_ra>
